<compile_context>
chip_gen: v5e
topology: v5e:2x2
jax: 0.10.0
libtpu: 0.0.40
codegen_flags: <defaults>
</compile_context>

<pallas_src>
import functools

import jax
import jax.numpy as jnp
from jax.experimental import pallas as pl
from jax.experimental.pallas import tpu as pltpu

ALPHA = 0.5        # ClassFocalLoss alpha (hardcoded in ClassBalancedLoss.__init__)
GAMMA = 0.0        # ClassFocalLoss gamma (hardcoded in ClassBalancedLoss.__init__)
EPS_FOCAL = 1e-6   # ClassFocalLoss.eps
EPS_DIST = 1e-6    # ClassBalancedLoss.epsilon
# Padding logit: exp(_NEG - max) underflows to 0 and never wins the max.
# NOTE: assumes every real logit is > -30000 (true for any sane network output).
_NEG = -30000.0

# Per-core VMEM budget for the double-buffered working set. Leaves headroom under
# v7x's 32 MiB scoped default / 64 MiB physical VMEM; v5e/v6e have 128 MiB physical.
_VMEM_TILE_BUDGET = 24 << 20


def _round_up(x, m):
    return (x + m - 1) // m * m


def _default_num_core_splits():
    """v7x has 2 TensorCores per chip, so a 'parallel' core-split axis is a real 2x.
    v5e/v6e have a single TC, where the extra grid axis is pure serial overhead."""
    try:
        kind = jax.devices()[0].device_kind.lower()
        if "v7" in kind or "7x" in kind:
            return 2
    except Exception:
        pass
    return 1


def _cb_loss_kernel(w_sref, logits_ref, targets_ref, out_ref, acc_ref, *, num_classes):
    """One (C_pad, tb) tile.

    w_sref     : (num_classes,) int32 SMEM (scalar prefetch); f32 bit patterns of
                 -alpha * class_balanced_weight[c]
    logits_ref : (C_pad, tb)  native dtype; classes on sublanes, batch on lanes
    targets_ref: (1, tb)      int32 labels (padded samples hold -1)
    out_ref    : (8, 128)     f32 partial-sum slab for this core-split
    acc_ref    : (1, tb)      f32 per-lane loss accumulator (VMEM scratch)
    """
    i = pl.program_id(1)

    @pl.when(i == 0)
    def _():
        acc_ref[...] = jnp.zeros_like(acc_ref)

    x = logits_ref[...].astype(jnp.float32)                      # (C_pad, tb)
    tgt = targets_ref[...]                                       # (1, tb) int32

    # one-hot along the sublane (class) axis -- needed to gather p_target
    cid = jax.lax.broadcasted_iota(jnp.int32, x.shape, dimension=0)
    one_hot = (cid == tgt).astype(jnp.float32)                   # (C_pad, tb)

    # numerically-stable softmax over classes: 3 sublane (XLU) reductions total
    m = jnp.max(x, axis=0, keepdims=True)                        # (1, tb)
    e = jnp.exp(x - m)                                           # (C_pad, tb)
    s = jnp.sum(e, axis=0, keepdims=True)                        # (1, tb)

    # target-class probability; divide replaced by EUP reciprocal (VALU has less slack)
    p_t = (jnp.sum(one_hot * e, axis=0, keepdims=True)
           * pl.reciprocal(s, approx=False) + EPS_FOCAL)         # (1, tb)

    # Per-sample class-balanced weight via a VPU select chain over SMEM scalars
    # (replaces a 4th sublane/XLU reduction). Weights carry the folded -alpha and
    # travel as int32 bit patterns; padded lanes (tgt == -1) keep 0 bits -> 0.0f.
    w_bits = jnp.zeros(tgt.shape, jnp.int32)
    for c in range(num_classes):
        w_bits = jnp.where(tgt == c, w_sref[c], w_bits)
    w_t = pltpu.bitcast(w_bits, jnp.float32)                     # (1, tb)

    # gamma == 0.0 resolved at trace time -> focal modulator (1 - p)^gamma == 1
    if GAMMA == 0.0:
        acc_ref[...] += jnp.log(p_t) * w_t
    else:
        acc_ref[...] += jnp.power(1.0 - p_t, GAMMA) * jnp.log(p_t) * w_t

    @pl.when(i == pl.num_programs(1) - 1)
    def _():
        total = jnp.sum(acc_ref[...])                            # per-core partial sum
        out_ref[...] = jnp.full(out_ref.shape, total, dtype=jnp.float32)


def class_balanced_loss(inputs, targets, *, beta=0.9, num_classes=7,
                        block_batch=131072, num_core_splits=None):
    """inputs: (B, C) float logits, targets: (B,) int labels. Returns scalar loss."""
    B, C = inputs.shape
    assert C == num_classes
    c_pad = _round_up(C, 8)

    nc = (_default_num_core_splits() if num_core_splits is None
          else max(int(num_core_splits), 1))

    # --- batch-tile sizing: large tiles amortize the ~0.35us per-grid-step cost;
    #     cap the double-buffered working set against the per-core VMEM budget. ---
    itemsize = jnp.dtype(inputs.dtype).itemsize
    # double-buffered logits + double-buffered targets + f32 accumulator scratch
    per_lane_bytes = c_pad * itemsize * 2 + 4 * 2 + 4
    tb_cap = max((_VMEM_TILE_BUDGET // per_lane_bytes) // 128 * 128, 128)
    tb = min(int(block_batch), tb_cap, _round_up(pl.cdiv(B, nc), 128))
    tb = max(_round_up(tb, 128), 128)
    nt = pl.cdiv(B, nc * tb)
    b_pad = nc * nt * tb
    vmem_limit = int(min(max(per_lane_bytes * tb * 5 // 4 + (4 << 20), 16 << 20),
                         48 << 20))

    # --- full-batch class distribution / weight (must see the WHOLE batch, so it
    #     is computed once here, not inside the batch-tiled kernel). Counts via
    #     scatter-add (no materialized (B, C) one-hot). Same (1 - beta**d) formula
    #     as the PyTorch module for fidelity. ---
    tgt_i32 = targets.astype(jnp.int32)
    counts = jnp.zeros((num_classes,), jnp.float32).at[tgt_i32].add(1.0)
    distribution = counts + EPS_DIST
    weight = (1.0 - beta) / (1.0 - jnp.power(jnp.float32(beta), distribution))
    # fold the constant -alpha of the focal term into the per-class weight; ship the
    # scalars through SMEM scalar prefetch as int32 bit patterns (bitcast in-kernel)
    w_bits = jax.lax.bitcast_convert_type(((-ALPHA) * weight).astype(jnp.float32),
                                          jnp.int32)

    # --- lane-dense layout: classes on sublanes, batch on the 128-lane axis.
    #     Keep the native dtype (no f32 upcast in HBM); pad classes/batch. ---
    x_t = jnp.full((c_pad, b_pad), _NEG, dtype=inputs.dtype)
    x_t = x_t.at[:C, :B].set(inputs.T)
    t_row = jnp.full((1, b_pad), -1, jnp.int32).at[0, :B].set(tgt_i32)

    kernel = functools.partial(_cb_loss_kernel, num_classes=num_classes)
    partial_slabs = pl.pallas_call(
        kernel,
        out_shape=jax.ShapeDtypeStruct((nc * 8, 128), jnp.float32),
        grid_spec=pltpu.PrefetchScalarGridSpec(
            num_scalar_prefetch=1,
            grid=(nc, nt),
            in_specs=[
                pl.BlockSpec((c_pad, tb), lambda c, i, w: (0, c * nt + i)),  # logits
                pl.BlockSpec((1, tb), lambda c, i, w: (0, c * nt + i)),      # targets
            ],
            out_specs=pl.BlockSpec((8, 128), lambda c, i, w: (c, 0)),
            scratch_shapes=[pltpu.VMEM((1, tb), jnp.float32)],
        ),
        compiler_params=pltpu.CompilerParams(
            dimension_semantics=("parallel", "arbitrary"),
            vmem_limit_bytes=vmem_limit),
    )(w_bits, x_t, t_row)

    partials = partial_slabs[::8, 0]               # (nc,) per-core-split partial sums
    return jnp.sum(partials) / jnp.float32(B)      # 'mean' reduction over the batch


def _reference_loss(inputs, targets, *, beta=0.9, num_classes=7):
    """Pure-JAX reference mirroring the PyTorch module."""
    one_hot = jax.nn.one_hot(targets, num_classes, dtype=jnp.float32)
    distribution = jnp.sum(one_hot, axis=0) + EPS_DIST
    weight = (1.0 - beta) / (1.0 - beta ** distribution)
    p = jax.nn.softmax(inputs.astype(jnp.float32), axis=1) + EPS_FOCAL
    focal = -ALPHA * jnp.log(p)   # gamma = 0
    loss_tmp = jnp.sum(one_hot * focal * weight[None, :], axis=1)
    return jnp.mean(loss_tmp)


if __name__ == "__main__":
    key = jax.random.PRNGKey(0)

    # Small shape consistent with the module: (batch=32, num_classes=7)
    B, C = 32, 7
    k_in, k_tgt = jax.random.split(key)
    inputs = jax.random.normal(k_in, (B, C), dtype=jnp.float32)
    targets = jax.random.randint(k_tgt, (B,), 0, C, dtype=jnp.int32)

    loss = jax.block_until_ready(
        class_balanced_loss(inputs, targets, beta=0.9, num_classes=C))
    ref = _reference_loss(inputs, targets, beta=0.9, num_classes=C)
    assert jnp.allclose(loss, ref, rtol=1e-4, atol=1e-5), (loss, ref)

    # Second check exercising multi-tile accumulation + ragged batch padding.
    B2 = 1000
    k_in2, k_tgt2 = jax.random.split(k_tgt)
    inputs2 = jax.random.normal(k_in2, (B2, C), dtype=jnp.float32)
    targets2 = jax.random.randint(k_tgt2, (B2,), 0, C, dtype=jnp.int32)
    loss2 = jax.block_until_ready(
        class_balanced_loss(inputs2, targets2, beta=0.9, num_classes=C,
                            block_batch=256))
    ref2 = _reference_loss(inputs2, targets2, beta=0.9, num_classes=C)
    assert jnp.allclose(loss2, ref2, rtol=1e-4, atol=1e-5), (loss2, ref2)

    print("KERNEL_OK")
</pallas_src>

<mosaic_0001>
module attributes {stable_mosaic.version = 11 : i64} {
  func.func @_cb_loss_kernel(%arg0: i32, %arg1: i32, %arg2: memref<7xi32, #tpu.memory_space<smem>>, %arg3: memref<8x128xf32, #tpu.memory_space<vmem>>, %arg4: memref<1x128xi32, #tpu.memory_space<vmem>>, %arg5: memref<8x128xf32, #tpu.memory_space<vmem>>, %arg6: memref<1x128xf32, #tpu.memory_space<vmem>>) attributes {dimension_semantics = [#tpu.dimension_semantics<parallel>, #tpu.dimension_semantics<arbitrary>], iteration_bounds = array<i64: 1, 1>, scalar_prefetch = 1 : i64, scratch_operands = 1 : i64, tpu.core_type = #tpu.core_type<tc>, window_params = [{transform_indices = @transform_0, window_bounds = array<i64: 8, 128>}, {transform_indices = @transform_1, window_bounds = array<i64: 1, 128>}, {transform_indices = @transform_2, window_bounds = array<i64: 8, 128>}]} {
    %c0_i32 = arith.constant 0 : i32
    %0 = arith.cmpi eq, %arg1, %c0_i32 : i32
    %1 = arith.extui %0 : i1 to i32
    %c0_i32_0 = arith.constant 0 : i32
    %2 = arith.cmpi ne, %1, %c0_i32_0 : i32
    scf.if %2 {
      %cst_16 = arith.constant 0.000000e+00 : f32
      %69 = vector.broadcast %cst_16 : f32 to vector<1x128xf32>
      %c0_17 = arith.constant 0 : index
      %c0_18 = arith.constant 0 : index
      %70 = vector.load %arg6[%c0_17, %c0_18] : memref<1x128xf32, #tpu.memory_space<vmem>>, vector<1x128xf32>
      tpu.vector_store %arg6[%c0_17, %c0_18], %69 {strides = array<i32>} : memref<1x128xf32, #tpu.memory_space<vmem>>, vector<1x128xf32>,
    } else {
    }
    %c0 = arith.constant 0 : index
    %c0_1 = arith.constant 0 : index
    %3 = vector.load %arg3[%c0, %c0_1] : memref<8x128xf32, #tpu.memory_space<vmem>>, vector<8x128xf32>
    %c0_2 = arith.constant 0 : index
    %c0_3 = arith.constant 0 : index
    %4 = vector.load %arg4[%c0_2, %c0_3] : memref<1x128xi32, #tpu.memory_space<vmem>>, vector<1x128xi32>
    %5 = tpu.iota {dimensions = array<i32: 0>} : vector<8x128xi32>
    %6 = vector.broadcast %4 : vector<1x128xi32> to vector<8x128xi32>
    %7 = arith.cmpi eq, %5, %6 : vector<8x128xi32>
    %8 = arith.extui %7 : vector<8x128xi1> to vector<8x128xi32>
    %9 = arith.sitofp %8 : vector<8x128xi32> to vector<8x128xf32>
    %cst = arith.constant dense<0xFF800000> : vector<128xf32>
    %10 = vector.multi_reduction <maximumf>, %3, %cst [0] : vector<8x128xf32> to vector<128xf32>
    %11 = vector.shape_cast %10 : vector<128xf32> to vector<1x128xf32>
    %12 = vector.broadcast %11 : vector<1x128xf32> to vector<8x128xf32>
    %13 = arith.subf %3, %12 : vector<8x128xf32>
    %14 = math.exp %13 : vector<8x128xf32>
    %cst_4 = arith.constant dense<0.000000e+00> : vector<128xf32>
    %15 = vector.multi_reduction <add>, %14, %cst_4 [0] : vector<8x128xf32> to vector<128xf32>
    %16 = vector.shape_cast %15 : vector<128xf32> to vector<1x128xf32>
    %17 = arith.mulf %9, %14 : vector<8x128xf32>
    %cst_5 = arith.constant dense<0.000000e+00> : vector<128xf32>
    %18 = vector.multi_reduction <add>, %17, %cst_5 [0] : vector<8x128xf32> to vector<128xf32>
    %19 = vector.shape_cast %18 : vector<128xf32> to vector<1x128xf32>
    %20 = tpu.reciprocal %16 : vector<1x128xf32> -> vector<1x128xf32>
    %21 = arith.mulf %19, %20 : vector<1x128xf32>
    %cst_6 = arith.constant 9.99999997E-7 : f32
    %22 = vector.broadcast %cst_6 : f32 to vector<1x128xf32>
    %23 = arith.addf %21, %22 : vector<1x128xf32>
    %c0_i32_7 = arith.constant 0 : i32
    %24 = vector.broadcast %c0_i32_7 : i32 to vector<1x128xi32>
    %c0_i32_8 = arith.constant 0 : i32
    %25 = vector.broadcast %c0_i32_8 : i32 to vector<1x128xi32>
    %26 = arith.cmpi eq, %4, %25 : vector<1x128xi32>
    %c0_9 = arith.constant 0 : index
    %27 = memref.load %arg2[%c0_9] : memref<7xi32, #tpu.memory_space<smem>>
    %28 = vector.broadcast %27 : i32 to vector<1x128xi32>
    %29 = arith.select %26, %28, %24 : vector<1x128xi1>, vector<1x128xi32>
    %c1_i32 = arith.constant 1 : i32
    %30 = vector.broadcast %c1_i32 : i32 to vector<1x128xi32>
    %31 = arith.cmpi eq, %4, %30 : vector<1x128xi32>
    %c1 = arith.constant 1 : index
    %32 = memref.load %arg2[%c1] : memref<7xi32, #tpu.memory_space<smem>>
    %33 = vector.broadcast %32 : i32 to vector<1x128xi32>
    %34 = arith.select %31, %33, %29 : vector<1x128xi1>, vector<1x128xi32>
    %c2_i32 = arith.constant 2 : i32
    %35 = vector.broadcast %c2_i32 : i32 to vector<1x128xi32>
    %36 = arith.cmpi eq, %4, %35 : vector<1x128xi32>
    %c2 = arith.constant 2 : index
    %37 = memref.load %arg2[%c2] : memref<7xi32, #tpu.memory_space<smem>>
    %38 = vector.broadcast %37 : i32 to vector<1x128xi32>
    %39 = arith.select %36, %38, %34 : vector<1x128xi1>, vector<1x128xi32>
    %c3_i32 = arith.constant 3 : i32
    %40 = vector.broadcast %c3_i32 : i32 to vector<1x128xi32>
    %41 = arith.cmpi eq, %4, %40 : vector<1x128xi32>
    %c3 = arith.constant 3 : index
    %42 = memref.load %arg2[%c3] : memref<7xi32, #tpu.memory_space<smem>>
    %43 = vector.broadcast %42 : i32 to vector<1x128xi32>
    %44 = arith.select %41, %43, %39 : vector<1x128xi1>, vector<1x128xi32>
    %c4_i32 = arith.constant 4 : i32
    %45 = vector.broadcast %c4_i32 : i32 to vector<1x128xi32>
    %46 = arith.cmpi eq, %4, %45 : vector<1x128xi32>
    %c4 = arith.constant 4 : index
    %47 = memref.load %arg2[%c4] : memref<7xi32, #tpu.memory_space<smem>>
    %48 = vector.broadcast %47 : i32 to vector<1x128xi32>
    %49 = arith.select %46, %48, %44 : vector<1x128xi1>, vector<1x128xi32>
    %c5_i32 = arith.constant 5 : i32
    %50 = vector.broadcast %c5_i32 : i32 to vector<1x128xi32>
    %51 = arith.cmpi eq, %4, %50 : vector<1x128xi32>
    %c5 = arith.constant 5 : index
    %52 = memref.load %arg2[%c5] : memref<7xi32, #tpu.memory_space<smem>>
    %53 = vector.broadcast %52 : i32 to vector<1x128xi32>
    %54 = arith.select %51, %53, %49 : vector<1x128xi1>, vector<1x128xi32>
    %c6_i32 = arith.constant 6 : i32
    %55 = vector.broadcast %c6_i32 : i32 to vector<1x128xi32>
    %56 = arith.cmpi eq, %4, %55 : vector<1x128xi32>
    %c6 = arith.constant 6 : index
    %57 = memref.load %arg2[%c6] : memref<7xi32, #tpu.memory_space<smem>>
    %58 = vector.broadcast %57 : i32 to vector<1x128xi32>
    %59 = arith.select %56, %58, %54 : vector<1x128xi1>, vector<1x128xi32>
    %60 = tpu.bitcast %59 : vector<1x128xi32> -> vector<1x128xf32>
    %c0_10 = arith.constant 0 : index
    %c0_11 = arith.constant 0 : index
    %61 = vector.load %arg6[%c0_10, %c0_11] : memref<1x128xf32, #tpu.memory_space<vmem>>, vector<1x128xf32>
    %62 = math.log %23 : vector<1x128xf32>
    %63 = arith.mulf %62, %60 : vector<1x128xf32>
    %64 = arith.addf %61, %63 : vector<1x128xf32>
    %c0_12 = arith.constant 0 : index
    %c0_13 = arith.constant 0 : index
    %65 = vector.load %arg6[%c0_12, %c0_13] : memref<1x128xf32, #tpu.memory_space<vmem>>, vector<1x128xf32>
    tpu.vector_store %arg6[%c0_12, %c0_13], %64 {strides = array<i32>} : memref<1x128xf32, #tpu.memory_space<vmem>>, vector<1x128xf32>,
    %c0_i32_14 = arith.constant 0 : i32
    %66 = arith.cmpi eq, %arg1, %c0_i32_14 : i32
    %67 = arith.extui %66 : i1 to i32
    %c0_i32_15 = arith.constant 0 : i32
    %68 = arith.cmpi ne, %67, %c0_i32_15 : i32
    scf.if %68 {
      %c0_16 = arith.constant 0 : index
      %c0_17 = arith.constant 0 : index
      %69 = vector.load %arg6[%c0_16, %c0_17] : memref<1x128xf32, #tpu.memory_space<vmem>>, vector<1x128xf32>
      %70 = vector.shape_cast %69 : vector<1x128xf32> to vector<1x1x128xf32>
      %cst_18 = arith.constant dense<0.000000e+00> : vector<1xf32>
      %71 = vector.multi_reduction <add>, %70, %cst_18 [1, 2] : vector<1x1x128xf32> to vector<1xf32>
      %72 = vector.shape_cast %71 : vector<1xf32> to vector<1x1x1xf32>
      %73 = vector.extract %72[0, 0, 0] : f32 from vector<1x1x1xf32>
      %74 = vector.broadcast %73 : f32 to vector<8x128xf32>
      %c0_19 = arith.constant 0 : index
      %c0_20 = arith.constant 0 : index
      %75 = vector.load %arg5[%c0_19, %c0_20] : memref<8x128xf32, #tpu.memory_space<vmem>>, vector<8x128xf32>
      tpu.vector_store %arg5[%c0_19, %c0_20], %74 {strides = array<i32>} : memref<8x128xf32, #tpu.memory_space<vmem>>, vector<8x128xf32>,
    } else {
    }
    return
  }
  func.func @transform_0(%arg0: i32, %arg1: i32, %arg2: memref<7xi32, #tpu.memory_space<smem>>) -> (i32, i32) {
    %c1_i32 = arith.constant 1 : i32
    %0 = arith.muli %arg0, %c1_i32 : i32
    %1 = arith.addi %0, %arg1 : i32
    %c0_i32 = arith.constant 0 : i32
    %c0_i32_0 = arith.constant 0 : i32
    return %c0_i32, %1 : i32, i32
  }
  func.func @transform_1(%arg0: i32, %arg1: i32, %arg2: memref<7xi32, #tpu.memory_space<smem>>) -> (i32, i32) {
    %c1_i32 = arith.constant 1 : i32
    %0 = arith.muli %arg0, %c1_i32 : i32
    %1 = arith.addi %0, %arg1 : i32
    %c0_i32 = arith.constant 0 : i32
    %c0_i32_0 = arith.constant 0 : i32
    return %c0_i32, %1 : i32, i32
  }
  func.func @transform_2(%arg0: i32, %arg1: i32, %arg2: memref<7xi32, #tpu.memory_space<smem>>) -> (i32, i32) {
    %c0_i32 = arith.constant 0 : i32
    %c0_i32_0 = arith.constant 0 : i32
    return %arg0, %c0_i32 : i32, i32
  }
}

</mosaic_0001>

<bundles_post_ra>
// kernel: tpu_custom_call.1
= control target key start
LH: loop header
LB: loop body
LE: loop exit
PB: predicated region body
PF: predicated region fallthrough
CT: control target
= control target key end

     0   :  { %s262_s15 = smov [#allocation4]   ;;  %s301_s0 = inlined_call_operand.hbm [shape: s32[7], index: 0, kind: input, shape index: {}]   ;;  %s302_s1 = inlined_call_operand.hbm [shape: f32[8,128], index: 1, kind: input, shape index: {}]   ;;  %s303_s2 = inlined_call_operand.vmem [shape: s32[1,128], index: 2, kind: input, shape index: {}]   ;;  %s304_s3 = inlined_call_operand.hbm [shape: f32[8,128], index: 3, kind: output, shape index: {}]  }
   0x1   :  { %s9_s14 = sshll.u32 %s301_s0, 4  ;;  %s10_s14 = int_to_ptr.hbm [resolvable:$true] %s9_s14 }
   0x2   :  { %12 = dma.hbm_to_smem %s10_s14, 16, %s262_s15, [#allocation3] }
   0x3   :  { %256 = dma.done.wait [#allocation3], 16 }
   0x4   :  { %257 = vsyncadd [#allocation3], 4294967280 }
   0x5   :  { %15 = sfence }
   0x6   :  { %16 = vsyncpa [#allocation6], 0 }
   0x7   :  { %17 = vsyncpa [#allocation7], 0  ;;  %s26_s18 = sshll.u32 %s302_s1, 4  ;;  %s263_s19 = smov [#allocation5]   ;;  %s27_s18 = int_to_ptr.hbm [resolvable:$true] %s26_s18 }
   0x8   :  { %s28_s20 = sshll.u32 %s263_s19, 4  ;;  %s29_s20 = int_to_ptr.vmem [resolvable:$true] %s28_s20 }
   0x9   :  { %31 = dma.hbm_to_vmem [thread:$0]  %s27_s18, 128, %s29_s20, [#allocation6]  }
   0xa   :  { %258 = dma.done.wait [#allocation6], 128  }
   0xb   :  { %259 = vsyncadd [#allocation6], 4294967168  ;;  %v264_v0 = vmov 0.0   ;;  %v58_v1 = vld [vmem:[#allocation5] sm:$0xff]  ;;  %v60_v7 = vlaneseq  ;;  %v189_v11 = vld [vmem:[%s303_s2] ss:$0 sm:$0xff] }
   0xc   :  { %57 = vst [vmem:[#allocation2] sm:$0x1] %v264_v0  ;;  %v66_v2 = vrot.slane %v58_v1, 4  ;;  %s105_s21 = sld [smem:[#allocation4]]  ;;  %v59_v25 = vld [vmem:[%s303_s2] sm:$0x1] }
   0xd   :  { %v61_v10 = vshrl.u32 %v60_v7, 7  ;;  %s177_s22 = sld [smem:[#allocation4 + $0x1]]  ;;  %vm104_vm1 = vcmp.eq.s32.totalorder %v59_v25, 0  ;;  %vm108_vm2 = vcmp.eq.s32.totalorder %v59_v25, 1  ;;  %vm112_vm6 = vcmp.eq.s32.totalorder %v59_v25, 2  ;;  %s265_s29 = smov [#allocation8]  }
   0xe   :  { %v67_v3 = vmax.f32 %v58_v1, %v66_v2  ;;  %s178_s25 = sld [smem:[#allocation4 + $0x2]]  ;;  %vm116_vm8 = vcmp.eq.s32.totalorder %v59_v25, 3  ;;  %vm120_vm9 = vcmp.eq.s32.totalorder %v59_v25, 4  ;;  %vm124_vm10 = vcmp.eq.s32.totalorder %v59_v25, 5  ;;  %s161_s30 = sshll.u32 %s265_s29, 4  ;;  %s162_s30 = int_to_ptr.vmem [resolvable:$true] %s161_s30 }
   0xf   :  { %vm63_vm0 = vcmp.eq.s32.totalorder %v61_v10, %v189_v11  ;;  %s179_s26 = sld [smem:[#allocation4 + $0x3]]  ;;  %vm128_vm11 = vcmp.eq.s32.totalorder %v59_v25, 6  ;;  %vm143_vm12 = vcmask 1040384   ;;  %s163_s6 = sshll.u32 %s304_s3, 4  ;;  %s164_s6 = int_to_ptr.hbm [resolvable:$true] %s163_s6 }
  0x10   :  { %v68_v4 = vrot.slane %v67_v3, 2  ;;  %v176_v13 = vsel %vm63_vm0, 1.0, %v264_v0  ;;  %s180_s27 = sld [smem:[#allocation4 + $0x4]] }
  0x11   :  { %s181_s2 = sld [smem:[#allocation4 + $0x5]] }
  0x12   :  { %v69_v5 = vmax.f32 %v67_v3, %v68_v4  ;;  %v106_v27 = vstv %s105_s21  ;;  %s182_s28 = sld [smem:[#allocation4 + $0x6]] }
  0x13   :  { %v107_v32 = vsel %vm104_vm1, %v106_v27, 0  ;;  %v110_v33 = vstv %s177_s22  ;;  %v133_v57 = vld [vmem:[#allocation2] sm:$0x1] }
  0x14   :  { %v70_v6 = vrot.slane %v69_v5, 1  ;;  %v111_v38 = vsel %vm108_vm2, %v110_v33, %v107_v32  ;;  %v114_v39 = vstv %s178_s25 }
  0x15   :  { %v115_v43 = vsel %vm112_vm6, %v114_v39, %v111_v38  ;;  %v118_v44 = vstv %s179_s26 }
  0x16   :  { %v71_v8 = vmax.f32 %v69_v5, %v70_v6  ;;  %v119_v47 = vsel %vm116_vm8, %v118_v44, %v115_v43  ;;  %v122_v48 = vstv %s180_s27 }
  0x17   :  { %v123_v50 = vsel %vm120_vm9, %v122_v48, %v119_v47  ;;  %v126_v51 = vstv %s181_s2 }
  0x18   :  { %v72_v9 = vsub.f32 %v58_v1, %v71_v8  ;;  %v127_v52 = vsel %vm124_vm10, %v126_v51, %v123_v50  ;;  %v130_v53 = vstv %s182_s28 }
  0x19   :  { %v131_v55 = vsel %vm128_vm11, %v130_v53, %v127_v52 }
  0x1a   :  { %v73_v12 = vmul.f32 1.442695, %v72_v9 }
  0x1c   :  { %190 = vpow2.f32 %v73_v12 }
  0x22   :  { %v191_v14 = vpop.eup %190 }
  0x23   :  { %v75_v15 = vrot.slane %v191_v14, 4  ;;  %v81_v16 = vmul.f32 %v191_v14, %v176_v13 }
  0x25   :  { %v76_v17 = vadd.f32 %v191_v14, %v75_v15  ;;  %v82_v19 = vrot.slane %v81_v16, 4 }
  0x27   :  { %v77_v18 = vrot.slane %v76_v17, 2  ;;  %v83_v22 = vadd.f32 %v82_v19, %v81_v16 }
  0x29   :  { %v78_v20 = vadd.f32 %v77_v18, %v76_v17  ;;  %v84_v24 = vrot.slane %v83_v22, 2 }
  0x2b   :  { %v79_v21 = vrot.slane %v78_v20, 1  ;;  %v85_v26 = vadd.f32 %v84_v24, %v83_v22 }
  0x2d   :  { %v80_v23 = vadd.f32 %v79_v21, %v78_v20  ;;  %v86_v30 = vrot.slane %v85_v26, 1 }
  0x2f   :  { %192 = vrcp.f32 %v80_v23  ;;  %v99_v31 = vand.u32 2147483648, %v80_v23  ;;  %vm93_vm3 = vweird.f32 %v80_v23  ;;  %v97_v35 = vand.u32 2147483647, %v80_v23 }
  0x30   :  { %v87_v40 = vadd.f32 %v86_v30, %v85_v26 }
  0x31   :  { %v100_v37 = vor.u32 1.1754944e-38, %v99_v31  ;;  %vm98_vm7 = vcmp.eq.f32.partialorder %v97_v35, 8.507059e+37 }
  0x35   :  { %v193_v28 = vpop.eup %192 }
  0x36   :  { %v89_v29 = vmul.f32 %v193_v28, %v80_v23  ;;  %vm94_vm4 = vweird.f32 %v193_v28 }
  0x37   :  { %vm95_vm5 = vmor %vm93_vm3, %vm94_vm4 }
  0x38   :  { %v90_v34 = vsub.f32 1.0, %v89_v29 }
  0x3a   :  { %v91_v36 = vmul.f32 %v193_v28, %v90_v34 }
  0x3c   :  { %v92_v41 = vadd.f32 %v193_v28, %v91_v36 }
  0x3e   :  { %v96_v42 = vsel %vm95_vm5, %v193_v28, %v92_v41 }
  0x3f   :  { %v101_v45 = vsel %vm98_vm7, %v100_v37, %v96_v42 }
  0x40   :  { %v102_v46 = vmul.f32 %v101_v45, %v87_v40 }
  0x42   :  { %v103_v49 = vadd.f32 1e-06, %v102_v46 }
  0x44   :  { %194 = vlog2.f32 %v103_v49 }
  0x4a   :  { %v195_v54 = vpop.eup %194 }
  0x4b   :  { %v135_v56 = vmul.f32 0.6931472, %v195_v54 }
  0x4d   :  { %v136_v58 = vmul.f32 %v135_v56, %v131_v55 }
  0x4f   :  { %v137_v59 = vadd.f32 %v136_v58, %v133_v57 }
  0x51   :  { %138 = vst [vmem:[#allocation2] sm:$0x1] %v137_v59 }
  0x58   :  { %v142_v60 = vld [vmem:[#allocation2] sm:$0x1] }
  0x59   :  { %v144_v61 = vsel %vm143_vm12, %v142_v60, 0.0 }
  0x5a   :  { %145 = vadd.xlane.f32.xlu0 %v144_v61 }
  0xcd   :  { %v146_v62 = vpop.xlane.xlu0 %145 }
  0xce   :  { %v147_v63 = vrot.slane %v146_v62, 4 }
  0xd0   :  { %v148_v0 = vadd.f32 %v147_v63, %v146_v62 }
  0xd2   :  { %v149_v1 = vrot.slane %v148_v0, 2 }
  0xd4   :  { %v150_v2 = vadd.f32 %v149_v1, %v148_v0 }
  0xd6   :  { %v151_v3 = vrot.slane %v150_v2, 1 }
  0xd8   :  { %v152_v4 = vadd.f32 %v151_v3, %v150_v2 }
  0xda   :  { %183 = vpush %v152_v4 }
 0x10b   :  { %s184_s7 = spop %183 }
 0x10c   :  { %v154_v5 = vstv %s184_s7 }
 0x10d   :  { %155 = vst [vmem:[#allocation8] sm:$0xff] %v154_v5 }
 0x10e   :  { %166 = dma.vmem_to_hbm [thread:$0]  %s162_s30, 128, %s164_s6, [#allocation7]  }
 0x10f   :  { %260 = dma.done.wait [#allocation7], 128  }
 0x110   :  { %261 = vsyncadd [#allocation7], 4294967168 }
 0x111   :  { %171 = vsyncpa [#allocation6], 1 }
 0x112   :  { %172 = vsyncpa [#allocation7], 1 }

</bundles_post_ra>
